<compile_context>
chip_gen: v7x
topology: tpu7x:2x2x1
jax: 0.10.0
libtpu: 0.0.40
codegen_flags: <defaults>
</compile_context>

<pallas_src>
import functools

import jax
import jax.numpy as jnp
from jax import lax
from jax.experimental import pallas as pl
from jax.experimental.pallas import tpu as pltpu


def _wce_kernel(pred_ref, tgt_ref, out_ref, s_ref, k_ref, *, hw, has_rem):
    n, c, tile = pred_ref.shape
    t = pl.program_id(0)

    @pl.when(t == 0)
    def _init():
        s_ref[...] = jnp.zeros_like(s_ref)
        k_ref[...] = jnp.zeros_like(k_ref)

    tgt = jnp.clip(tgt_ref[...], 0, c - 1)                          # (n, tile) i32

    if has_rem:
        # Only the last grid step can contain invalid (pad) lanes; fold that
        # validity into the target as a -1 sentinel so its one-hot row is all
        # zeros and counts/sums stay clean.  Skipped statically when hw%tile==0.
        lane = t * tile + lax.broadcasted_iota(jnp.int32, (n, tile), 1)
        valid = lane < hw                                            # (n, tile) bool
        tgt = jnp.where(valid, tgt, -1)

    # Pass 1: running channel max (VPU elementwise; re-reading VMEM slices is
    # nearly free -> no c live f32 slabs).
    m = pred_ref[:, 0, :].astype(jnp.float32)
    for i in range(1, c):
        m = jnp.maximum(m, pred_ref[:, i, :].astype(jnp.float32))

    # Pass 2: fused sum-exp (EUP) + gather of the target-class logit (select).
    sumexp = jnp.zeros((n, tile), jnp.float32)
    gathered = jnp.zeros((n, tile), jnp.float32)
    for i in range(c):
        xi = pred_ref[:, i, :].astype(jnp.float32)
        sumexp = sumexp + jnp.exp(xi - m)
        gathered = jnp.where(tgt == i, xi, gathered)

    logp_t = gathered - (jnp.log(sumexp) + m)                        # (n, tile)
    if has_rem:
        # Select (not multiply): pad-lane garbage/NaN must be dropped BEFORE
        # the MXU contraction (NaN * 0 is still NaN in a dot product).
        logp_t = jnp.where(valid, logp_t, 0.0)

    # Lane-dense one-hot(target): (n, c, tile) with c on sublanes.
    cls = lax.broadcasted_iota(jnp.int32, (n, c, tile), 1)
    onehot = (tgt[:, None, :] == cls).astype(jnp.float32)

    # Per-class, per-sample partial sums on the MXU (contraction over lanes):
    #   row 0 -> S[:, i] += sum_hw( 1[tgt==i] * logp_i )
    #   row 1 -> K[:, i] += sum_hw( 1[tgt==i] )
    rows = jnp.stack([logp_t, jnp.ones_like(logp_t)], axis=1)        # (n, 2, tile)
    sk = jnp.einsum('nrt,nct->nrc', rows, onehot,
                    preferred_element_type=jnp.float32)              # (n, 2, c)
    s_ref[...] += sk[:, 0, :]
    k_ref[...] += sk[:, 1, :]

    @pl.when(t == pl.num_programs(0) - 1)
    def _finalize():
        s = s_ref[...]                                               # (n, c)
        k = k_ref[...]                                               # (n, c)
        counts = jnp.sum(k, axis=0, keepdims=True)                   # (1, c) global
        inv = pl.reciprocal(counts + 1e-6)                           # exact 1/(cnt+eps)
        num = jnp.sum(s * inv, axis=1, keepdims=True)                # (n, 1)
        den = jnp.sum(k * inv, axis=1, keepdims=True)                # (n, 1)
        per_sample = num * pl.reciprocal(den)
        out_ref[...] = -(jnp.sum(per_sample, axis=0, keepdims=True) / n)


def _roundup(x, m):
    return -(-x // m) * m


def _vmem_budget_bytes(n, c, tile, pred_itemsize):
    """Rough per-tile VMEM footprint: double-buffered blocks + f32 temporaries."""
    sub = {1: 32, 2: 16}.get(pred_itemsize, 8)              # sublane packing per dtype
    pred_blk = 2 * n * _roundup(c, sub) * tile * pred_itemsize
    tgt_blk = 2 * _roundup(n, 8) * tile * 4
    onehot = 2 * n * _roundup(c, 8) * tile * 4               # one-hot + its iota
    slabs = 10 * _roundup(n, 8) * tile * 4                   # m/sumexp/gathered/... slack
    return pred_blk + tgt_blk + onehot + slabs + (2 << 20)


def _pick_tile_and_vmem(n, c, hw, pred_itemsize, tile_hw):
    """Pick the lane-tile and an explicit scoped-VMEM budget.

    Bigger tiles amortize the ~0.35 us per-grid-step overhead on this
    HBM-bound kernel; the budget is re-derived per call and capped so a tile
    that compiles for v6e/v5e (128 MiB physical) also fits v7x's 64 MiB/TC.
    """
    cap = 56 << 20
    tile_hw = max(128, (tile_hw // 128) * 128)
    tile = hw if (hw < 128 or hw <= tile_hw) else tile_hw
    while tile > 128 and _vmem_budget_bytes(n, c, tile, pred_itemsize) > cap:
        tile = max(128, (tile // 2 // 128) * 128)
    vmem = int(min(cap, max(16 << 20,
                            int(1.25 * _vmem_budget_bytes(n, c, tile, pred_itemsize)))))
    return tile, vmem


def weighted_cross_entropy_loss(pred, target, *, tile_hw=4096):
    """pred: (N, C, H, W) float (any float dtype); target: (N,H,W) or (N,1,H,W) int."""
    n, c, H, W = pred.shape
    hw = H * W

    if target.ndim == 4:
        target = target[:, 0]
    tgt2 = jnp.broadcast_to(target.astype(jnp.int32), (n, H, W)).reshape(n, hw)

    # No dtype cast here: ship bf16/f32 as-is, cast in-kernel per channel slice.
    pred2 = pred.reshape(n, c, hw)

    itemsize = jnp.dtype(pred.dtype).itemsize
    tile, vmem_bytes = _pick_tile_and_vmem(n, c, hw, itemsize, tile_hw)
    num_tiles = pl.cdiv(hw, tile)
    has_rem = (hw % tile) != 0

    kernel = functools.partial(_wce_kernel, hw=hw, has_rem=has_rem)

    out = pl.pallas_call(
        kernel,
        out_shape=jax.ShapeDtypeStruct((1, 1), jnp.float32),
        grid_spec=pltpu.PrefetchScalarGridSpec(
            num_scalar_prefetch=0,
            grid=(num_tiles,),
            in_specs=[
                pl.BlockSpec((n, c, tile), lambda t: (0, 0, t)),
                pl.BlockSpec((n, tile), lambda t: (0, t)),
            ],
            out_specs=pl.BlockSpec((1, 1), lambda t: (0, 0)),
            scratch_shapes=[
                pltpu.VMEM((n, c), jnp.float32),   # S: per-sample per-class logp sums
                pltpu.VMEM((n, c), jnp.float32),   # K: per-sample per-class counts
            ],
        ),
        # Global class counts make the HW axis a reduction -> "arbitrary".
        compiler_params=pltpu.CompilerParams(
            dimension_semantics=("arbitrary",),
            vmem_limit_bytes=vmem_bytes,
        ),
    )(pred2, tgt2)
    return out[0, 0]


def _reference(pred, target):
    """Pure-JAX reference mirroring the PyTorch module."""
    n, c, H, W = pred.shape
    if target.ndim == 4:
        target = target[:, 0]
    t = jnp.clip(target.astype(jnp.int32), 0, c - 1)
    t = jnp.broadcast_to(t, (n, H, W))
    logp = jax.nn.log_softmax(pred.astype(jnp.float32), axis=1)
    gathered = jnp.take_along_axis(logp, t[:, None], axis=1)[:, 0]   # (n,H,W)
    counts = jnp.stack([jnp.sum((t == i).astype(jnp.float32)) for i in range(c)])
    w = 1.0 / (counts[t] + 1e-6)                                     # (n,H,W)
    num = jnp.sum((gathered * w).reshape(n, -1), axis=1)
    den = jnp.sum(w.reshape(n, -1), axis=1)
    return -jnp.mean(num / den)


if __name__ == "__main__":
    key = jax.random.PRNGKey(0)
    kp, kt, kp2, kt2, kp3, kt3 = jax.random.split(key, 6)

    # Test 1: canonical small shape, multi-tile path (tile_hw=128 -> grid=2),
    # exercises the statically mask-free (hw % tile == 0) fast path.
    N, C, H, W = 2, 4, 16, 16
    pred = jax.random.normal(kp, (N, C, H, W), dtype=jnp.float32)
    target = jax.random.randint(kt, (N, H, W), 0, C, dtype=jnp.int32)

    loss = jax.block_until_ready(weighted_cross_entropy_loss(pred, target, tile_hw=128))
    ref = jax.block_until_ready(_reference(pred, target))
    assert jnp.allclose(loss, ref, rtol=1e-5, atol=1e-5), (loss, ref)

    # Test 2: non-128-multiple spatial size (partial last tile) + out-of-range
    # target values (exercises clamping and the sentinel tail-lane masking).
    N2, C2, H2, W2 = 2, 5, 10, 15
    pred2 = jax.random.normal(kp2, (N2, C2, H2, W2), dtype=jnp.float32)
    target2 = jax.random.randint(kt2, (N2, H2, W2), -1, C2 + 1, dtype=jnp.int32)

    loss2 = jax.block_until_ready(
        weighted_cross_entropy_loss(pred2, target2, tile_hw=128))
    ref2 = jax.block_until_ready(_reference(pred2, target2))
    assert jnp.allclose(loss2, ref2, rtol=1e-5, atol=1e-5), (loss2, ref2)

    # Test 3: bf16 pred on the default (single full-extent tile) path —
    # HBM traffic stays bf16, all in-kernel math is f32.
    pred3 = jax.random.normal(kp3, (N, C, H, W), dtype=jnp.float32).astype(jnp.bfloat16)
    target3 = jax.random.randint(kt3, (N, H, W), 0, C, dtype=jnp.int32)

    loss3 = jax.block_until_ready(weighted_cross_entropy_loss(pred3, target3))
    ref3 = jax.block_until_ready(_reference(pred3, target3))
    assert jnp.allclose(loss3, ref3, rtol=2e-4, atol=2e-4), (loss3, ref3)

    print("KERNEL_OK")
</pallas_src>

<mosaic_0001>
module attributes {stable_mosaic.version = 11 : i64} {
  func.func @_wce_kernel(%arg0: i32, %arg1: memref<2x4x128xf32, #tpu.memory_space<vmem>>, %arg2: memref<2x128xi32, #tpu.memory_space<vmem>>, %arg3: memref<1x1xf32, #tpu.memory_space<vmem>>, %arg4: memref<2x4xf32, #tpu.memory_space<vmem>>, %arg5: memref<2x4xf32, #tpu.memory_space<vmem>>) attributes {dimension_semantics = [#tpu.dimension_semantics<arbitrary>], iteration_bounds = array<i64: 2>, scalar_prefetch = 0 : i64, scratch_operands = 2 : i64, tpu.core_type = #tpu.core_type<tc>, window_params = [{transform_indices = @transform_0, window_bounds = array<i64: 2, 4, 128>}, {transform_indices = @transform_1, window_bounds = array<i64: 2, 128>}, {pipeline_mode = #tpu.pipeline_mode<synchronous>, transform_indices = @transform_2, window_bounds = array<i64: 1, 1>}]} {
    %c0_i32 = arith.constant 0 : i32
    %0 = arith.cmpi eq, %arg0, %c0_i32 : i32
    %1 = arith.extui %0 : i1 to i32
    %c0_i32_0 = arith.constant 0 : i32
    %2 = arith.cmpi ne, %1, %c0_i32_0 : i32
    scf.if %2 {
      %cst_39 = arith.constant 0.000000e+00 : f32
      %80 = vector.broadcast %cst_39 : f32 to vector<2x4xf32>
      %c0_40 = arith.constant 0 : index
      %c0_41 = arith.constant 0 : index
      %81 = vector.load %arg4[%c0_40, %c0_41] : memref<2x4xf32, #tpu.memory_space<vmem>>, vector<2x4xf32>
      tpu.vector_store %arg4[%c0_40, %c0_41], %80 {strides = array<i32>} : memref<2x4xf32, #tpu.memory_space<vmem>>, vector<2x4xf32>,
      %cst_42 = arith.constant 0.000000e+00 : f32
      %82 = vector.broadcast %cst_42 : f32 to vector<2x4xf32>
      %c0_43 = arith.constant 0 : index
      %c0_44 = arith.constant 0 : index
      %83 = vector.load %arg5[%c0_43, %c0_44] : memref<2x4xf32, #tpu.memory_space<vmem>>, vector<2x4xf32>
      tpu.vector_store %arg5[%c0_43, %c0_44], %82 {strides = array<i32>} : memref<2x4xf32, #tpu.memory_space<vmem>>, vector<2x4xf32>,
    } else {
    }
    %c0 = arith.constant 0 : index
    %c0_1 = arith.constant 0 : index
    %3 = vector.load %arg2[%c0, %c0_1] : memref<2x128xi32, #tpu.memory_space<vmem>>, vector<2x128xi32>
    %c0_i32_2 = arith.constant 0 : i32
    %c3_i32 = arith.constant 3 : i32
    %4 = vector.broadcast %c0_i32_2 : i32 to vector<2x128xi32>
    %5 = arith.maxsi %4, %3 : vector<2x128xi32>
    %6 = vector.broadcast %c3_i32 : i32 to vector<2x128xi32>
    %7 = arith.minsi %6, %5 : vector<2x128xi32>
    %c0_3 = arith.constant 0 : index
    %c0_4 = arith.constant 0 : index
    %c0_5 = arith.constant 0 : index
    %8 = vector.load %arg1[%c0_3, %c0_4, %c0_5] : memref<2x4x128xf32, #tpu.memory_space<vmem>>, vector<2x1x128xf32>
    %9 = vector.shape_cast %8 : vector<2x1x128xf32> to vector<2x128xf32>
    %c0_6 = arith.constant 0 : index
    %c1 = arith.constant 1 : index
    %c0_7 = arith.constant 0 : index
    %10 = vector.load %arg1[%c0_6, %c1, %c0_7] : memref<2x4x128xf32, #tpu.memory_space<vmem>>, vector<2x1x128xf32>
    %11 = vector.shape_cast %10 : vector<2x1x128xf32> to vector<2x128xf32>
    %12 = arith.maximumf %9, %11 : vector<2x128xf32>
    %c0_8 = arith.constant 0 : index
    %c2 = arith.constant 2 : index
    %c0_9 = arith.constant 0 : index
    %13 = vector.load %arg1[%c0_8, %c2, %c0_9] : memref<2x4x128xf32, #tpu.memory_space<vmem>>, vector<2x1x128xf32>
    %14 = vector.shape_cast %13 : vector<2x1x128xf32> to vector<2x128xf32>
    %15 = arith.maximumf %12, %14 : vector<2x128xf32>
    %c0_10 = arith.constant 0 : index
    %c3 = arith.constant 3 : index
    %c0_11 = arith.constant 0 : index
    %16 = vector.load %arg1[%c0_10, %c3, %c0_11] : memref<2x4x128xf32, #tpu.memory_space<vmem>>, vector<2x1x128xf32>
    %17 = vector.shape_cast %16 : vector<2x1x128xf32> to vector<2x128xf32>
    %18 = arith.maximumf %15, %17 : vector<2x128xf32>
    %cst = arith.constant 0.000000e+00 : f32
    %19 = vector.broadcast %cst : f32 to vector<2x128xf32>
    %cst_12 = arith.constant 0.000000e+00 : f32
    %20 = vector.broadcast %cst_12 : f32 to vector<2x128xf32>
    %c0_13 = arith.constant 0 : index
    %c0_14 = arith.constant 0 : index
    %c0_15 = arith.constant 0 : index
    %21 = vector.load %arg1[%c0_13, %c0_14, %c0_15] : memref<2x4x128xf32, #tpu.memory_space<vmem>>, vector<2x1x128xf32>
    %22 = vector.shape_cast %21 : vector<2x1x128xf32> to vector<2x128xf32>
    %23 = arith.subf %22, %18 : vector<2x128xf32>
    %24 = math.exp %23 : vector<2x128xf32>
    %25 = arith.addf %19, %24 : vector<2x128xf32>
    %c0_i32_16 = arith.constant 0 : i32
    %26 = vector.broadcast %c0_i32_16 : i32 to vector<2x128xi32>
    %27 = arith.cmpi eq, %7, %26 : vector<2x128xi32>
    %28 = arith.select %27, %22, %20 : vector<2x128xi1>, vector<2x128xf32>
    %c0_17 = arith.constant 0 : index
    %c1_18 = arith.constant 1 : index
    %c0_19 = arith.constant 0 : index
    %29 = vector.load %arg1[%c0_17, %c1_18, %c0_19] : memref<2x4x128xf32, #tpu.memory_space<vmem>>, vector<2x1x128xf32>
    %30 = vector.shape_cast %29 : vector<2x1x128xf32> to vector<2x128xf32>
    %31 = arith.subf %30, %18 : vector<2x128xf32>
    %32 = math.exp %31 : vector<2x128xf32>
    %33 = arith.addf %25, %32 : vector<2x128xf32>
    %c1_i32 = arith.constant 1 : i32
    %34 = vector.broadcast %c1_i32 : i32 to vector<2x128xi32>
    %35 = arith.cmpi eq, %7, %34 : vector<2x128xi32>
    %36 = arith.select %35, %30, %28 : vector<2x128xi1>, vector<2x128xf32>
    %c0_20 = arith.constant 0 : index
    %c2_21 = arith.constant 2 : index
    %c0_22 = arith.constant 0 : index
    %37 = vector.load %arg1[%c0_20, %c2_21, %c0_22] : memref<2x4x128xf32, #tpu.memory_space<vmem>>, vector<2x1x128xf32>
    %38 = vector.shape_cast %37 : vector<2x1x128xf32> to vector<2x128xf32>
    %39 = arith.subf %38, %18 : vector<2x128xf32>
    %40 = math.exp %39 : vector<2x128xf32>
    %41 = arith.addf %33, %40 : vector<2x128xf32>
    %c2_i32 = arith.constant 2 : i32
    %42 = vector.broadcast %c2_i32 : i32 to vector<2x128xi32>
    %43 = arith.cmpi eq, %7, %42 : vector<2x128xi32>
    %44 = arith.select %43, %38, %36 : vector<2x128xi1>, vector<2x128xf32>
    %c0_23 = arith.constant 0 : index
    %c3_24 = arith.constant 3 : index
    %c0_25 = arith.constant 0 : index
    %45 = vector.load %arg1[%c0_23, %c3_24, %c0_25] : memref<2x4x128xf32, #tpu.memory_space<vmem>>, vector<2x1x128xf32>
    %46 = vector.shape_cast %45 : vector<2x1x128xf32> to vector<2x128xf32>
    %47 = arith.subf %46, %18 : vector<2x128xf32>
    %48 = math.exp %47 : vector<2x128xf32>
    %49 = arith.addf %41, %48 : vector<2x128xf32>
    %c3_i32_26 = arith.constant 3 : i32
    %50 = vector.broadcast %c3_i32_26 : i32 to vector<2x128xi32>
    %51 = arith.cmpi eq, %7, %50 : vector<2x128xi32>
    %52 = arith.select %51, %46, %44 : vector<2x128xi1>, vector<2x128xf32>
    %53 = math.log %49 : vector<2x128xf32>
    %54 = arith.addf %53, %18 : vector<2x128xf32>
    %55 = arith.subf %52, %54 : vector<2x128xf32>
    %56 = tpu.iota {dimensions = array<i32: 1>} : vector<2x4x128xi32>
    %57 = vector.shape_cast %7 : vector<2x128xi32> to vector<2x1x128xi32>
    %58 = vector.broadcast %57 : vector<2x1x128xi32> to vector<2x4x128xi32>
    %59 = arith.cmpi eq, %58, %56 : vector<2x4x128xi32>
    %60 = arith.extui %59 : vector<2x4x128xi1> to vector<2x4x128xi32>
    %61 = arith.sitofp %60 : vector<2x4x128xi32> to vector<2x4x128xf32>
    %cst_27 = arith.constant 1.000000e+00 : f32
    %62 = vector.broadcast %cst_27 : f32 to vector<2x128xf32>
    %63 = vector.shape_cast %55 : vector<2x128xf32> to vector<2x1x128xf32>
    %64 = vector.shape_cast %62 : vector<2x128xf32> to vector<2x1x128xf32>
    %65 = tpu.concatenate %63, %64 in 1 : vector<2x1x128xf32>, vector<2x1x128xf32> -> vector<2x2x128xf32>
    "tpu.trace_start"() <{level = 10 : i32, message = "nrt,nct->nrc"}> : () -> ()
    %cst_28 = arith.constant dense<0.000000e+00> : vector<2x2x4xf32>
    %66 = tpu.matmul %65, %61, %cst_28 {dimension_numbers = #tpu.dot_dimension_numbers<[2], [2], [1], [1], [0, 0, 0, 1, 1, 1], [0], [0]>} : vector<2x2x128xf32>, vector<2x4x128xf32>, vector<2x2x4xf32> -> vector<2x2x4xf32>
    "tpu.trace_stop"() : () -> ()
    %c0_29 = arith.constant 0 : index
    %c0_30 = arith.constant 0 : index
    %67 = vector.load %arg4[%c0_29, %c0_30] : memref<2x4xf32, #tpu.memory_space<vmem>>, vector<2x4xf32>
    %68 = vector.extract_strided_slice %66 {offsets = [0, 0, 0], sizes = [2, 1, 4], strides = [1, 1, 1]} : vector<2x2x4xf32> to vector<2x1x4xf32>
    %69 = vector.shape_cast %68 : vector<2x1x4xf32> to vector<2x4xf32>
    %70 = arith.addf %67, %69 : vector<2x4xf32>
    %c0_31 = arith.constant 0 : index
    %c0_32 = arith.constant 0 : index
    %71 = vector.load %arg4[%c0_31, %c0_32] : memref<2x4xf32, #tpu.memory_space<vmem>>, vector<2x4xf32>
    tpu.vector_store %arg4[%c0_31, %c0_32], %70 {strides = array<i32>} : memref<2x4xf32, #tpu.memory_space<vmem>>, vector<2x4xf32>,
    %c0_33 = arith.constant 0 : index
    %c0_34 = arith.constant 0 : index
    %72 = vector.load %arg5[%c0_33, %c0_34] : memref<2x4xf32, #tpu.memory_space<vmem>>, vector<2x4xf32>
    %73 = vector.extract_strided_slice %66 {offsets = [0, 1, 0], sizes = [2, 1, 4], strides = [1, 1, 1]} : vector<2x2x4xf32> to vector<2x1x4xf32>
    %74 = vector.shape_cast %73 : vector<2x1x4xf32> to vector<2x4xf32>
    %75 = arith.addf %72, %74 : vector<2x4xf32>
    %c0_35 = arith.constant 0 : index
    %c0_36 = arith.constant 0 : index
    %76 = vector.load %arg5[%c0_35, %c0_36] : memref<2x4xf32, #tpu.memory_space<vmem>>, vector<2x4xf32>
    tpu.vector_store %arg5[%c0_35, %c0_36], %75 {strides = array<i32>} : memref<2x4xf32, #tpu.memory_space<vmem>>, vector<2x4xf32>,
    %c1_i32_37 = arith.constant 1 : i32
    %77 = arith.cmpi eq, %arg0, %c1_i32_37 : i32
    %78 = arith.extui %77 : i1 to i32
    %c0_i32_38 = arith.constant 0 : i32
    %79 = arith.cmpi ne, %78, %c0_i32_38 : i32
    scf.if %79 {
      %c0_39 = arith.constant 0 : index
      %c0_40 = arith.constant 0 : index
      %80 = vector.load %arg4[%c0_39, %c0_40] : memref<2x4xf32, #tpu.memory_space<vmem>>, vector<2x4xf32>
      %c0_41 = arith.constant 0 : index
      %c0_42 = arith.constant 0 : index
      %81 = vector.load %arg5[%c0_41, %c0_42] : memref<2x4xf32, #tpu.memory_space<vmem>>, vector<2x4xf32>
      %cst_43 = arith.constant dense<0.000000e+00> : vector<4xf32>
      %82 = vector.multi_reduction <add>, %81, %cst_43 [0] : vector<2x4xf32> to vector<4xf32>
      %83 = vector.shape_cast %82 : vector<4xf32> to vector<1x4xf32>
      %cst_44 = arith.constant 9.99999997E-7 : f32
      %84 = vector.broadcast %cst_44 : f32 to vector<1x4xf32>
      %85 = arith.addf %83, %84 : vector<1x4xf32>
      %86 = tpu.reciprocal %85 : vector<1x4xf32> -> vector<1x4xf32>
      %87 = vector.broadcast %86 : vector<1x4xf32> to vector<2x4xf32>
      %88 = arith.mulf %80, %87 : vector<2x4xf32>
      %cst_45 = arith.constant dense<0.000000e+00> : vector<2xf32>
      %89 = vector.multi_reduction <add>, %88, %cst_45 [1] : vector<2x4xf32> to vector<2xf32>
      %90 = vector.shape_cast %89 : vector<2xf32> to vector<2x1xf32>
      %91 = vector.broadcast %86 : vector<1x4xf32> to vector<2x4xf32>
      %92 = arith.mulf %81, %91 : vector<2x4xf32>
      %cst_46 = arith.constant dense<0.000000e+00> : vector<2xf32>
      %93 = vector.multi_reduction <add>, %92, %cst_46 [1] : vector<2x4xf32> to vector<2xf32>
      %94 = vector.shape_cast %93 : vector<2xf32> to vector<2x1xf32>
      %95 = tpu.reciprocal %94 : vector<2x1xf32> -> vector<2x1xf32>
      %96 = arith.mulf %90, %95 : vector<2x1xf32>
      %cst_47 = arith.constant dense<0.000000e+00> : vector<1xf32>
      %97 = vector.multi_reduction <add>, %96, %cst_47 [0] : vector<2x1xf32> to vector<1xf32>
      %98 = vector.shape_cast %97 : vector<1xf32> to vector<1x1xf32>
      %cst_48 = arith.constant 2.000000e+00 : f32
      %99 = vector.broadcast %cst_48 : f32 to vector<1x1xf32>
      %100 = arith.divf %98, %99 : vector<1x1xf32>
      %cst_49 = arith.constant 0.000000e+00 : f32
      %101 = vector.broadcast %cst_49 : f32 to vector<1x1xf32>
      %102 = arith.subf %101, %100 : vector<1x1xf32>
      %c0_50 = arith.constant 0 : index
      %c0_51 = arith.constant 0 : index
      %103 = vector.load %arg3[%c0_50, %c0_51] : memref<1x1xf32, #tpu.memory_space<vmem>>, vector<1x1xf32>
      tpu.vector_store %arg3[%c0_50, %c0_51], %102 {strides = array<i32>} : memref<1x1xf32, #tpu.memory_space<vmem>>, vector<1x1xf32>,
    } else {
    }
    return
  }
  func.func @transform_0(%arg0: i32) -> (i32, i32, i32) {
    %c0_i32 = arith.constant 0 : i32
    %c0_i32_0 = arith.constant 0 : i32
    %c0_i32_1 = arith.constant 0 : i32
    return %c0_i32, %c0_i32_0, %arg0 : i32, i32, i32
  }
  func.func @transform_1(%arg0: i32) -> (i32, i32) {
    %c0_i32 = arith.constant 0 : i32
    %c0_i32_0 = arith.constant 0 : i32
    return %c0_i32, %arg0 : i32, i32
  }
  func.func @transform_2(%arg0: i32) -> (i32, i32) {
    %c0_i32 = arith.constant 0 : i32
    %c0_i32_0 = arith.constant 0 : i32
    %c0_i32_1 = arith.constant 0 : i32
    return %c0_i32, %c0_i32_0 : i32, i32
  }
}

</mosaic_0001>

<bundles_post_ra>
// kernel: tpu_custom_call.1
= control target key start
LH: loop header
LB: loop body
LE: loop exit
PB: predicated region body
PF: predicated region fallthrough
CT: control target
= control target key end

     0   :  { %7 = vsyncpa [#allocation5], 0  ;;  %s1154_s0 = inlined_call_operand.hbm [shape: f32[2,4,256], index: 0, kind: input, shape index: {}]   ;;  %s1155_s1 = inlined_call_operand.hbm [shape: s32[2,256], index: 1, kind: input, shape index: {}]   ;;  %s1156_s2 = inlined_call_operand.hbm [shape: f32[1,1], index: 2, kind: output, shape index: {}]  }
   0x1   :  { %9 = vsyncpa [#allocation5 + $0x1], 0 }
   0x2   :  { %10 = vsyncpa [#allocation8], 0 }
   0x3   :  { %12 = vsyncpa [#allocation8 + $0x1], 0 }
   0x4   :  { %13 = vsyncpa [#allocation6], 0  ;;  %s897_s9 = smov 0   ;;  %s899_s10 = smov 0  }
   0x5   :  { %s901_s11 = smov 0   ;;  %s903_s12 = smov 0  }
   0x6 LB: > { %s916_s13 = sadd.s32 4294967295, %s869_s12   ;;  %s919_s14 = sadd.s32 1, %s869_s12   ;;  %s869_s12 = sphi %s903_s12, %s1166_s12   ;;  %s865_s11 = sphi %s901_s11, %s1165_s11   ;;  %s861_s10 = sphi %s899_s10, %s1164_s10   ;;  %s857_s9 = sphi %s897_s9, %s1163_s9  }
   0x7   : > { %s23_s15 = ssub.s32 %s869_s12, %s919_s14  ;;  %s26_s16 = sadd.s32 1, %s865_s11 }
   0x8   : > { %p24_p0 = scmp.eq.s32.totalorder %s23_s15, 0  ;;  %p33_p1 = scmp.ne.s32.totalorder %s865_s11, %s861_s10 }
   0x9   : > { %p34_p2 = scmp.eq.s32.totalorder %s869_s12, 0  ;;  %p39_p3 = scmp.ne.s32.totalorder %s861_s10, %s857_s9 }
   0xa   : > { %s929_s17 = scalar_select %p24_p0, %s865_s11, %s26_s16  }
   0xb   : > { %p35_p4 = por %p34_p2, %p33_p1  ;;  %p40_p5 = scmp.eq.s32.totalorder %s916_s13, 0 }
   0xc   : > { %p673_p6 = scmp.lt.s32.totalorder %s869_s12, 2  ;;  %s938_s19 = sand.u32 1, %s865_s11  }
   0xd   : > { %p933_p7 = por %p40_p5, %p39_p3  ;;  %s627_s20 = sshll.u32 %s938_s19, 3 }
   0xe   : > { %s628_s21 = sshll.u32 %s869_s12, 6  ;;  %s114_s25 = scalar_lea.vmem [#allocation4], %s627_s20 }
   0xf   : > { %s1158_s18 = scalar_select %p933_p7, 1, 0 }
  0x10   : > { %s945_s24 = scalar_lea.hbm %s1154_s0, %s628_s21  ;;  %s120_s26 = sshll.u32 %s114_s25, 4  ;;  %s947_s26 = int_to_ptr.vmem [resolvable:$true] %s120_s26 }
  0x11   : > { %p949_p8 = pnand %p673_p6, %p35_p4  ;;  %s111_s28 = scalar_lea.sflag [#allocation5], %s938_s19 }
  0x12   : > { %s741_s29 = scalar_lea.hbm %s945_s24, 128  ;;  %s746_s4 = scalar_lea.hbm %s1154_s0, 256 }
  0x13   : > { %p742_p9 = scmp.ne.s32.totalorder %s945_s24, %s741_s29  ;;  %p743_p10 = pneg %p949_p8 }
  0x14   : > { %p747_p13 = scmp.lt.u32.totalorder %s945_s24, %s1154_s0  ;;  %p748_p0 = scmp.lt.u32.totalorder %s746_s4, %s741_s29 }
  0x15   : > { %p744_p11 = pnand %p743_p10, %p742_p9  ;;  %p750_p2 = scmp.lt.u32.totalorder %s741_s29, %s945_s24 }
  0x16   : > { %p749_p1 = por %p748_p0, %p747_p13 }
  0x17   : > { %p745_p12 = pneg %p744_p11 }
  0x18   : > { %p751_p3 = por %p750_p2, %p749_p1 }
  0x1a   : > { %p752_p4 = pnand %p751_p3, %p745_p12 }
  0x1c   : > { %755 = shalt.err (!%p752_p4)
}
  0x1d   : > { %s756_s7 = scalar_lea.vmem %s947_s26, 128  ;;  %s871_s8 = smov [#allocation4]  }
  0x1e   : > { %p757_p5 = scmp.ne.s32.totalorder %s947_s26, %s756_s7  ;;  %s761_s9 = sshll.u32 %s871_s8, 4  ;;  %s762_s9 = int_to_ptr.vmem [resolvable:$false] %s761_s9 }
  0x1f   : > { %s763_s15 = scalar_lea.vmem %s762_s9, 256  ;;  %p764_p11 = scmp.lt.s32.totalorder %s947_s26, %s762_s9 }
  0x20   : > { %p759_p6 = pnand %p757_p5, %p743_p10  ;;  %p765_p13 = scmp.lt.s32.totalorder %s763_s15, %s756_s7 }
  0x22   : > { %p760_p9 = pneg %p759_p6  ;;  %p766_p0 = por %p765_p13, %p764_p11 }
  0x24   : > { %p767_p1 = pnand %p766_p0, %p760_p9 }
  0x26   : > { %770 = shalt.err (!%p767_p1)
}
  0x27   : > { %s872_s16 = smov 128   ;;  %s873_s20 = smov 64  }
  0x28   : > { %s874_s21 = smov 4   ;;  %p631_p12 = scmp.ge.s32.totalorder %s869_s12, 1 }
  0x29   : > { %669 = dma.hbm_to_vmem [thread:$0]  (!%p949_p8), %s945_s24, 128, %s947_s26, %s111_s28, %s872_s16, %s873_s20, %s874_s21  }
  0x2a   : > { %p146_p2 = scmp.lt.s32.totalorder %s869_s12, 3  ;;  %s629_s22 = sshll.u32 %s938_s19, 1 }
  0x2b   : > { %s630_s25 = sshll.u32 %s869_s12, 5  ;;  %s134_s29 = scalar_lea.vmem [#allocation7], %s629_s22 }
  0x2c   : > { %p984_p3 = pnand %p631_p12, %p146_p2  ;;  %s141_s30 = sshll.u32 %s134_s29, 4  ;;  %s142_s30 = int_to_ptr.vmem [resolvable:$true] %s141_s30 }
  0x2d   : > { %s992_s5 = scalar_lea.hbm %s1155_s1, %s630_s25  ;;  %s131_s24 = scalar_lea.sflag [#allocation8], %s938_s19 }
  0x2e   : > { %s1160_s23 = scalar_select %p984_p3, 1, 0 }
  0x2f   : > { %s771_s26 = scalar_lea.hbm %s992_s5, 32  ;;  %s776_s6 = scalar_lea.hbm %s1155_s1, 64 }
  0x30   : > { %p772_p4 = scmp.ne.s32.totalorder %s992_s5, %s771_s26  ;;  %p777_p9 = scmp.lt.u32.totalorder %s992_s5, %s1155_s1 }
  0x31   : > { %p778_p11 = scmp.lt.u32.totalorder %s776_s6, %s771_s26  ;;  %p780_p0 = scmp.lt.u32.totalorder %s771_s26, %s992_s5 }
  0x32   : > { %p774_p5 = pnand %p772_p4, %p743_p10 }
  0x33   : > { %p779_p13 = por %p778_p11, %p777_p9 }
  0x34   : > { %p775_p6 = pneg %p774_p5 }
  0x35   : > { %p781_p1 = por %p780_p0, %p779_p13 }
  0x37   : > { %p782_p12 = pnand %p781_p1, %p775_p6 }
  0x39   : > { %785 = shalt.err (!%p782_p12)
}
  0x3a   : > { %s786_s19 = scalar_lea.vmem %s142_s30, 32  ;;  %s875_s9 = smov [#allocation7]  }
  0x3b   : > { %p787_p2 = scmp.ne.s32.totalorder %s142_s30, %s786_s19  ;;  %s791_s15 = sshll.u32 %s875_s9, 4  ;;  %s792_s15 = int_to_ptr.vmem [resolvable:$false] %s791_s15 }
  0x3c   : > { %s793_s16 = scalar_lea.vmem %s792_s15, 64  ;;  %p794_p7 = scmp.lt.s32.totalorder %s142_s30, %s792_s15 }
  0x3d   : > { %p789_p4 = pnand %p787_p2, %p743_p10  ;;  %p795_p3 = scmp.lt.s32.totalorder %s793_s16, %s786_s19 }
  0x3f   : > { %p790_p5 = pneg %p789_p4  ;;  %p796_p9 = por %p795_p3, %p794_p7 }
  0x41   : > { %p797_p11 = pnand %p796_p9, %p790_p5 }
  0x43   : > { %800 = shalt.err (!%p797_p11)
}
  0x44   : > { %672 = dma.hbm_to_vmem [thread:$0]  (!%p949_p8), %s992_s5, 32, %s142_s30, %s131_s24  }
  0x45   : > { %p1161_p6 = scmp.ne.s32.totalorder %s1160_s23, 0 }
  0x46   : > { %s152_s20 = sand.u32 (!%p1161_p6), 1, %s861_s10   ;;  %p1162_p10 = scmp.ne.s32.totalorder (!%p1161_p6), %s1158_s18, 0 }
  0x47   : > { %150 = sbr.rel (%p1161_p6) target bundleno = 601 (0x259), region = 28  ;;  %s632_s21 = sshll.u32 (!%p1161_p6), %s152_s20, 3 }
  0x48   : > { %s153_s22 = scalar_lea.sflag (!%p1161_p6), [#allocation5], %s152_s20  ;;  %s1017_s25 = scalar_lea.vmem (!%p1161_p6), [#allocation4], %s632_s21 }
  0x4e   : > { %844 = dma.done.wait (%p1162_p10), %s153_s22, 128  }
  0x4f   : > { %846 = vsyncadd (%p1162_p10), %s153_s22, 4294967168  ;;  %s633_s29 = sshll.u32 %s152_s20, 1  ;;  %s162_s27 = scalar_lea.sflag [#allocation8], %s152_s20 }
  0x50   : > { %s165_s3 = scalar_lea.vmem [#allocation7], %s633_s29 }
  0x51   : > { %848 = dma.done.wait (%p1162_p10), %s162_s27, 32  }
  0x52   : > { %850 = vsyncadd (%p1162_p10), %s162_s27, 4294967264  ;;  %p634_p7 = scmp.ne.s32.totalorder %s916_s13, 0 }
  0x53   : > { %vm190_vm0 = vcmask (!%p634_p7), 25600   ;;  %v876_v0 = vmov (!%p634_p7), 0.0  }
  0x54   : > { %189 = sbr.rel (%p634_p7) target bundleno = 91 (0x5b), region = 40  ;;  %191 = vst.msk [vmem:[#allocation2] sm:$0x3] (!%p634_p7), %vm190_vm0, %v876_v0  ;;  %192 = vst.msk [vmem:[#allocation3] sm:$0x3] (!%p634_p7), %vm190_vm0, %v876_v0 }
  0x5b PF: > { %v193_v1 = vld [vmem:[%s165_s3] sm:$0x3]  ;;  %v285_v2 = vlaneseq  ;;  %v877_v3 = vmov 0.0   ;;  %v878_v4 = vmov 1966171168   ;;  %vm879_vm2 = vmmov 0  }
  0x5c   : > { %648 = vmatprep.subr.mxu0 %v877_v3  ;;  %vm194_vm1 = vcmp.gt.s32.totalorder %v193_v1, 0  ;;  %v288_v5 = vunpack.c.l.s4 %v878_v4  ;;  %653 = vmatprep.subr.mxu1 %v877_v3  ;;  %v1029_v6 = vld [vmem:[%s1017_s25] sm:$0x1]  ;;  %v1032_v7 = vld [vmem:[%s1017_s25 + $0x4] sm:$0x1]  ;;  %v880_v43 = vmov 1.0  }
  0x5d   : > { %v195_v8 = vsel %vm194_vm1, %v193_v1, 0  ;;  %v286_v9 = vshrl.u32 %v285_v2, 7  ;;  %650 = vmatprep.mubr.msk.f32.mxu0 %vm879_vm2, %v877_v3  ;;  %v1035_v10 = vld [vmem:[%s1017_s25 + $0x1] sm:$0x1]  ;;  %v1038_v11 = vld [vmem:[%s1017_s25 + $0x5] sm:$0x1]  ;;  %655 = vmatprep.mubr.msk.f32.mxu1 %vm879_vm2, %v877_v3 }
  0x5e   : > { %vm196_vm3 = vcmp.lt.s32.totalorder %v195_v8, 3  ;;  %v289_v12 = vunpack.c.0.s8 %v288_v5  ;;  %v202_v13 = vmax.f32 %v1029_v6, %v1035_v10  ;;  %v203_v14 = vmax.f32 %v1032_v7, %v1038_v11  ;;  %v1045_v15 = vld [vmem:[%s1017_s25 + $0x2] sm:$0x1]  ;;  %v1048_v16 = vld [vmem:[%s1017_s25 + $0x6] sm:$0x1]  ;;  %p639_p8 = scmp.ne.s32.totalorder %s916_s13, 1 }
  0x5f   : > { %v1051_v17 = vld [vmem:[%s1017_s25 + $0x3] sm:$0x1]  ;;  %v1054_v18 = vld [vmem:[%s1017_s25 + $0x7] sm:$0x1]  ;;  %v1060_v22 = vsel %vm196_vm3, %v195_v8, 3  ;;  %v311_v24 = vsub.s32 0, %v286_v9 }
  0x60   : > { %v1056_v19 = vsub.s32 %v289_v12, %v286_v9  ;;  %v206_v20 = vmax.f32 %v202_v13, %v1045_v15  ;;  %v207_v21 = vmax.f32 %v203_v14, %v1048_v16  ;;  %v223_v63 = vrot.slane %v1032_v7, 7 }
  0x61   : > { %vm224_vm6 = vcmask 1041409   ;;  %v239_v0 = vrot.slane %v1038_v11, 7  ;;  %vm220_vm7 = vcmp.eq.s32.totalorder %v1060_v22, 0  ;;  %v254_v2 = vrot.slane %v1048_v16, 7 }
  0x62   : > { %v293_v23 = vrot.slane %v1060_v22, %v1056_v19  ;;  %v1065_v25 = vmax.f32 %v206_v20, %v1051_v17  ;;  %v1068_v26 = vmax.f32 %v207_v21, %v1054_v18  ;;  %v225_v1 = vsel %vm224_vm6, %v223_v63, %v1029_v6 }
  0x63   : > { %v227_v3 = vsel %vm220_vm7, %v225_v1, 0.0  ;;  %vm236_vm8 = vcmp.eq.s32.totalorder %v1060_v22, 1  ;;  %v240_v4 = vsel %vm224_vm6, %v239_v0, %v1035_v10  ;;  %v269_v5 = vrot.slane %v1054_v18, 7 }
  0x64   : > { %v301_v27 = vrot.slane %v293_v23, %v1056_v19  ;;  %v294_v28 = vcombine.high %v293_v23, %v293_v23  ;;  %v212_v29 = vsub.f32 %v1029_v6, %v1065_v25  ;;  %v213_v30 = vsub.f32 %v1032_v7, %v1068_v26 }
  0x65   : > { %v228_v31 = vsub.f32 %v1035_v10, %v1065_v25  ;;  %v229_v32 = vsub.f32 %v1038_v11, %v1068_v26  ;;  %v243_v33 = vsub.f32 %v1045_v15, %v1065_v25  ;;  %v244_v40 = vsub.f32 %v1048_v16, %v1068_v26 }
  0x66   : > { %v312_v34 = vrot.slane %v301_v27, %v311_v24  ;;  %v308_v35 = vrot.slane %v294_v28, %v1056_v19  ;;  %v214_v36 = vmul.f32 1.442695, %v212_v29  ;;  %v216_v37 = vmul.f32 1.442695, %v213_v30  ;;  %v500_v30 = vld [vmem:[#allocation3] sm:$0x3] }
  0x67   : > { %v230_v38 = vmul.f32 1.442695, %v228_v31  ;;  %v232_v39 = vmul.f32 1.442695, %v229_v32  ;;  %v245_v42 = vmul.f32 1.442695, %v243_v33  ;;  %v258_v45 = vsub.f32 %v1051_v17, %v1065_v25 }
  0x68   : > { %vm317_vm4 = vcmp.eq.s32.totalorder %v312_v34, %v286_v9  ;;  %v316_v41 = vrot.slane %v308_v35, %v311_v24  ;;  %717 = vpow2.f32 %v214_v36  ;;  %v247_v44 = vmul.f32 1.442695, %v244_v40  ;;  %v491_v32 = vld [vmem:[#allocation2] sm:$0x3] }
  0x69   : > { %649 = vmatpush3.xpose.msk.msra.mxu0 %vm317_vm4, %v880_v43  ;;  %719 = vpow2.f32 %v216_v37  ;;  %v259_v46 = vsub.f32 %v1054_v18, %v1068_v26  ;;  %v260_v47 = vmul.f32 1.442695, %v258_v45  ;;  %v242_v8 = vsel %vm236_vm8, %v240_v4, %v227_v3 }
  0x6a   : > { %vm318_vm5 = vcmp.eq.s32.totalorder %v316_v41, %v286_v9  ;;  %721 = vpow2.f32 %v230_v38  ;;  %vm251_vm9 = vcmp.eq.s32.totalorder %v1060_v22, 2  ;;  %v255_v9 = vsel %vm224_vm6, %v254_v2, %v1045_v15 }
  0x6b   : > { %654 = vmatpush3.xpose.msk.msra.mxu1 %vm318_vm5, %v880_v43  ;;  %723 = vpow2.f32 %v232_v39  ;;  %v262_v48 = vmul.f32 1.442695, %v259_v46  ;;  %v257_v13 = vsel %vm251_vm9, %v255_v9, %v242_v8  ;;  %vm266_vm10 = vcmp.eq.s32.totalorder %v1060_v22, 3 }
  0x6c   : > { %725 = vpow2.f32 %v245_v42  ;;  %v270_v14 = vsel %vm224_vm6, %v269_v5, %v1051_v17  ;;  %vm348_vm11 = vcmask 1040384   ;;  %vm498_vm12 = vcmask 25600  }
  0x6d   : > { %727 = vpow2.f32 %v247_v44  ;;  %v272_v18 = vsel %vm266_vm10, %v270_v14, %v257_v13  ;;  %vm531_vm13 = vcmask (!%p639_p8), 1041408   ;;  %vm542_vm14 = vcmask (!%p639_p8), 0  }
  0x6e   : > { %729 = vpow2.f32 %v260_v47 }
  0x6f   : > { %731 = vpow2.f32 %v262_v48 }
  0x72   : > { %v718_v49 = vpop.eup %717 }
  0x73   : > { %v720_v50 = vpop.eup %719 }
  0x74   : > { %v722_v51 = vpop.eup %721 }
  0x75   : > { %v724_v52 = vpop.eup %723  ;;  %v234_v53 = vadd.f32 %v722_v51, %v718_v49 }
  0x76   : > { %v726_v54 = vpop.eup %725  ;;  %v235_v55 = vadd.f32 %v724_v52, %v720_v50 }
  0x77   : > { %v728_v56 = vpop.eup %727  ;;  %v249_v57 = vadd.f32 %v726_v54, %v234_v53 }
  0x78   : > { %v730_v58 = vpop.eup %729  ;;  %v250_v59 = vadd.f32 %v728_v56, %v235_v55 }
  0x79   : > { %v732_v60 = vpop.eup %731  ;;  %v264_v61 = vadd.f32 %v730_v58, %v249_v57 }
  0x7a   : > { %v265_v62 = vadd.f32 %v732_v60, %v250_v59 }
  0x7b   : > { %733 = vlog2.f32 %v264_v61 }
  0x7c   : > { %735 = vlog2.f32 %v265_v62 }
  0x85   : > { %v734_v7 = vpop.eup %733 }
  0x86   : > { %v736_v11 = vpop.eup %735  ;;  %v274_v12 = vmul.f32 0.6931472, %v734_v7 }
  0x87   : > { %v276_v6 = vmul.f32 0.6931472, %v736_v11 }
  0x88   : > { %v277_v10 = vadd.f32 %v274_v12, %v1065_v25 }
  0x89   : > { %v278_v16 = vadd.f32 %v276_v6, %v1068_v26 }
  0x8b   : > { %v281_v20 = vrot.slane %v278_v16, 7 }
  0x8d   : > { %v282_v21 = vsel %vm224_vm6, %v281_v20, %v277_v10 }
  0x8e   : > { %v284_v23 = vsub.f32 %v272_v18, %v282_v21 }
  0x90   : > { %v330_v15 = vrot.slane %v284_v23, %v1056_v19 }
  0x92   : > { %v338_v24 = vrot.slane %v330_v15, %v1056_v19  ;;  %v331_v27 = vcombine.high %v330_v15, %v330_v15 }
  0x94   : > { %v349_v28 = vsel %vm348_vm11, %v338_v24, 1.0  ;;  %v345_v22 = vrot.slane %v331_v27, %v1056_v19 }
  0x95   : > { %651 = vmatmul.mubr.f32.vlgmr.msra.gmra.mrb[0].mxu0 %v349_v28 }
  0x96   : > { %v350_v17 = vsel %vm348_vm11, %v345_v22, 1.0 }
  0x97   : > { %656 = vmatmul.mubr.f32.vlgmr.msra.gmra.mrb[0].mxu1 %v350_v17 }
 0x168   : > { %v417_v25 = vpop.f32.mrb[0].mxu0 }
 0x169   : > { %v501_v29 = vrot.slane %v417_v25, 1  ;;  %v652_v26 = vpop.f32.mrb[1].mxu0 }
 0x16a   : > { %v487_v31 = vpop.f32.mrb[0].mxu1  ;;  %509 = sbr.rel (%p639_p8) target bundleno = 576 (0x240), region = 44 }
 0x16b   : > { %v494_v33 = vrot.slane %v487_v31, 7  ;;  %v502_v34 = vsel %vm224_vm6, %v487_v31, %v501_v29  ;;  %v657_v35 = vpop.f32.mrb[1].mxu1 }
 0x16c   : > { %v504_v36 = vadd.f32 %v502_v34, %v500_v30 }
 0x16d   : > { %v495_v37 = vsel %vm224_vm6, %v494_v33, %v417_v25 }
 0x16e   : > { %v497_v38 = vadd.f32 %v495_v37, %v491_v32  ;;  %505 = vst.msk [vmem:[#allocation3] sm:$0x3] %vm498_vm12, %v504_v36 }
 0x170   : > { %499 = vst.msk [vmem:[#allocation2] sm:$0x3] %vm498_vm12, %v497_v38 }
 0x175   : > { %v511_v19 = vld [vmem:[#allocation3] sm:$0x3] }
 0x176   : > { %v512_v39 = vsel %vm498_vm12, %v511_v19, 0.0 }
 0x177   : > { %v513_v40 = vrot.slane %v512_v39, 4  ;;  %v510_v47 = vld [vmem:[#allocation2] sm:$0x3] }
 0x179   : > { %v514_v41 = vadd.f32 %v513_v40, %v512_v39 }
 0x17b   : > { %v515_v42 = vrot.slane %v514_v41, 2 }
 0x17d   : > { %v516_v43 = vadd.f32 %v515_v42, %v514_v41 }
 0x17f   : > { %v517_v44 = vrot.slane %v516_v43, 1 }
 0x181   : > { %v518_v45 = vadd.f32 %v517_v44, %v516_v43 }
 0x183   : > { %v519_v46 = vadd.f32 1e-06, %v518_v45 }
 0x185   : > { %737 = vrcp.f32 %v519_v46 }
 0x18f   : > { %v738_v48 = vpop.eup %737 }
 0x190   : > { %v525_v49 = vmul.f32 %v738_v48, %v511_v19  ;;  %v521_v50 = vmul.f32 %v738_v48, %v510_v47 }
 0x192   : > { %v526_v51 = vsel %vm498_vm12, %v525_v49, 0.0  ;;  %v522_v52 = vsel %vm498_vm12, %v521_v50, 0.0 }
 0x193   : > { %527 = vadd.xlane.f32.xlu0 %v526_v51 }
 0x197   : > { %523 = vadd.xlane.f32.xlu0 %v522_v52 }
 0x220   : > { %v528_v53 = vpop.xlane.xlu0 %527 }
 0x221   : > { %739 = vrcp.f32 %v528_v53 }
 0x224   : > { %v524_v54 = vpop.xlane.xlu0 %523 }
 0x22b   : > { %v740_v55 = vpop.eup %739 }
 0x22c   : > { %v530_v56 = vmul.f32 %v740_v55, %v524_v54 }
 0x22e   : > { %v532_v57 = vsel %vm531_vm13, %v530_v56, 0.0 }
 0x22f   : > { %v533_v58 = vrot.slane %v532_v57, 4 }
 0x231   : > { %v534_v59 = vadd.f32 %v533_v58, %v532_v57 }
 0x233   : > { %v535_v60 = vrot.slane %v534_v59, 2 }
 0x235   : > { %v536_v61 = vadd.f32 %v535_v60, %v534_v59 }
 0x237   : > { %v537_v62 = vrot.slane %v536_v61, 1 }
 0x239   : > { %v538_v63 = vadd.f32 %v537_v62, %v536_v61 }
 0x23b   : > { %v540_v0 = vmul.f32 0.5, %v538_v63 }
 0x23d   : > { %v541_v1 = vsub.f32 0.0, %v540_v0 }
 0x23f   : > { %543 = vst.msk [vmem:[#allocation9] sm:$0x1] %vm542_vm14, %v541_v1 }
 0x240 PF: > { %p674_p3 = scmp.eq.s32.totalorder %s916_s13, 1  ;;  %s881_s18 = smov [#allocation9]  }
 0x241   : > { %s551_s23 = sshll.u32 %s881_s18, 4  ;;  %s552_s23 = int_to_ptr.vmem [resolvable:$true] %s551_s23 }
 0x242   : > { %s801_s30 = scalar_lea.vmem %s552_s23, 16  ;;  %s807_s4 = scalar_lea.vmem %s552_s23, 32 }
 0x243   : > { %p802_p13 = scmp.ne.s32.totalorder %s552_s23, %s801_s30  ;;  %p808_p12 = scmp.lt.s32.totalorder %s552_s23, %s552_s23 }
 0x244   : > { %p809_p2 = scmp.lt.s32.totalorder %s807_s4, %s801_s30 }
 0x245   : > { %p803_p0 = pnand %p802_p13, %p674_p3 }
 0x246   : > { %p810_p4 = por %p809_p2, %p808_p12 }
 0x247   : > { %p804_p1 = pneg %p803_p0 }
 0x249   : > { %p811_p5 = pnand %p810_p4, %p804_p1 }
 0x24b   : > { %814 = shalt.err (!%p811_p5)
}
 0x24c   : > { %s815_s26 = scalar_lea.hbm %s1156_s2, 16 }
 0x24d   : > { %p816_p9 = scmp.ne.s32.totalorder %s1156_s2, %s815_s26  ;;  %p821_p10 = scmp.lt.u32.totalorder %s815_s26, %s1156_s2 }
 0x24f   : > { %p817_p11 = pnand %p816_p9, %p674_p3 }
 0x251   : > { %p818_p6 = pneg %p817_p11 }
 0x253   : > { %p823_p7 = pnand %p821_p10, %p818_p6 }
 0x255   : > { %826 = shalt.err (!%p823_p7)
}
 0x256   : > { %663 = dma.vmem_to_hbm [thread:$0]  (%p674_p3), %s552_s23, 16, %s1156_s2, [#allocation6]  }
 0x257   : > { %852 = dma.done.wait (%p674_p3), [#allocation6], 16  }
 0x258   : > { %854 = vsyncadd (%p674_p3), [#allocation6], 4294967280 }
 0x259 PF: > { %p16_p8 = scmp.ge.s32.totalorder %s919_s14, 4   ;;  %s1163_s9 = smov %s861_s10 }
 0x25a   : > { %s1164_s10 = smov %s865_s11  ;;  %s1165_s11 = smov %s929_s17 }
 0x25b   : > { %s1166_s12 = smov %s919_s14  ;;  %18 = sbr.rel (!%p16_p8) target bundleno = 6 (0x6), region = 86 }
 0x262   :  { %564 = vsyncpa [#allocation5], 1 }
 0x263   :  { %566 = vsyncpa [#allocation5 + $0x1], 1 }
 0x264   :  { %567 = vsyncpa [#allocation8], 1 }
 0x265   :  { %569 = vsyncpa [#allocation8 + $0x1], 1 }
 0x266   :  { %570 = vsyncpa [#allocation6], 1 }
 0x267   :  { %572 = vsyncpa [#allocation6 + $0x1], 1 }

</bundles_post_ra>
